<compile_context>
chip_gen: v5e
topology: v5e:2x2
jax: 0.10.0
libtpu: 0.0.40
codegen_flags: <defaults>
</compile_context>

<pallas_src>
import math

import numpy as np
import jax
import jax.numpy as jnp
from jax.experimental import pallas as pl
from jax.experimental.pallas import tpu as pltpu


def periodic_kernel(x_ref, coeff_ref, out_ref):
    # x_ref:     (TR, 1)    f32  -- one input scalar per flattened row
    # coeff_ref: (base, N)  f32  -- resident coefficient slab, base = lcm(8, F)
    # out_ref:   (TR, 2N)   f32  -- [cos | sin] along the lane axis
    base, n = coeff_ref.shape
    tr = out_ref.shape[0]
    g = tr // base

    # Clean sublane split (base is a multiple of 8): no relayout.
    xg = x_ref[...].reshape(g, base, 1)        # (g, base, 1) per-row scalar
    cg = coeff_ref[...][None, :, :]            # (1, base, N) resident slab

    # Two aligned half-slab stores; the product is recomputed per half so no
    # full (TR, N) prod temp has to round-trip through VMEM.
    out_ref[:, :n] = jnp.cos(xg * cg).reshape(tr, n)
    out_ref[:, n:] = jnp.sin(xg * cg).reshape(tr, n)


def _round_up(a: int, b: int) -> int:
    return ((a + b - 1) // b) * b


def periodic_multi_bandwidth(x: jax.Array, coefficients: jax.Array,
                             tile_rows: int | None = None) -> jax.Array:
    """x: (B, F) f32, coefficients: (F, N) f32 -> (B, F, 2N) f32."""
    B, F = x.shape
    Fc, N = coefficients.shape
    assert F == Fc, "x.shape[1] must equal n_features"
    R = B * F

    # base: multiple of 8 (sublane tiling) and of F (coefficient period).
    base = (8 * F) // math.gcd(8, F)           # lcm(8, F)

    if tile_rows is None:
        # 2048 keeps the double-buffered working set under v5e's 16 MiB
        # default scoped VMEM; safe on v6e/v7x too (raiseable there).
        tile_rows = 2048
    tile_rows = _round_up(max(min(tile_rows, _round_up(R, base)), base), base)
    # Ensure >= 2 grid steps when R allows, so the "parallel" axis can be
    # sharded across both TensorCores on v7x.
    if R >= 2 * base:
        tile_rows = min(tile_rows, _round_up(-(-R // 2), base))

    num_tiles = pl.cdiv(R, tile_rows)

    # Layout plumbing only: flattened rows on sublanes, no padding, no copy.
    x_flat = x.reshape(R, 1).astype(jnp.float32)

    # Tiny (base, N) slab (a few KiB) so the resident block keeps sublanes
    # fully packed; NOT the old tile_rows-height materialization.
    coeff_slab = jnp.tile(coefficients.astype(jnp.float32), (base // F, 1))

    cost = pl.CostEstimate(
        flops=R * N,                                   # broadcast multiply
        transcendentals=2 * R * N,                     # cos + sin
        bytes_accessed=4 * (R + base * N + 2 * R * N),
    )

    out_flat = pl.pallas_call(
        periodic_kernel,
        out_shape=jax.ShapeDtypeStruct((R, 2 * N), jnp.float32),
        grid=(num_tiles,),
        in_specs=[
            pl.BlockSpec((tile_rows, 1), lambda i: (i, 0)),   # streamed rows
            pl.BlockSpec((base, N), lambda i: (0, 0)),        # resident coeffs
        ],
        out_specs=pl.BlockSpec((tile_rows, 2 * N), lambda i: (i, 0)),
        compiler_params=pltpu.CompilerParams(
            dimension_semantics=("parallel",),
        ),
        cost_estimate=cost,
    )(x_flat, coeff_slab)

    # Free reshape (metadata only) back to the module's output shape.
    return out_flat.reshape(B, F, 2 * N)


def make_coefficients(key, n_features: int, n: int, sigma) -> jax.Array:
    """Deterministic stand-in for the module's __init__ (faithful to its logic)."""
    tmp_len = n // len(sigma)
    scale = np.ones((1, n), dtype=np.float32)
    for i, e in enumerate(sigma):
        # NOTE: faithful to the PyTorch code, which slices dim 0 (size 1),
        # so only i == 0 has any effect when tmp_len >= 1.
        scale[tmp_len * i: tmp_len * (i + 1)] *= e
    coeff = jax.random.normal(key, (n_features, n), dtype=jnp.float32)
    return coeff * jnp.asarray(scale)


def reference(x: jax.Array, coefficients: jax.Array) -> jax.Array:
    prod = coefficients[None] * x[:, None, :, None]               # (B, 1, F, N)
    tmp = jnp.concatenate([jnp.cos(prod), jnp.sin(prod)], -1)     # (B, 1, F, 2N)
    return tmp.mean(1)                                            # (B, F, 2N)


if __name__ == "__main__":
    key = jax.random.PRNGKey(0)
    kx, kc, kx2 = jax.random.split(key, 3)

    # Small shapes consistent with the module's forward.
    B, n_features, n = 8, 4, 128
    sigma = [0.05, 0.5]

    x = jax.random.normal(kx, (B, n_features), dtype=jnp.float32)
    coefficients = make_coefficients(kc, n_features, n, sigma)

    out = periodic_multi_bandwidth(x, coefficients)
    out = jax.block_until_ready(out)
    assert out.shape == (B, n_features, 2 * n)
    np.testing.assert_allclose(np.asarray(out),
                               np.asarray(reference(x, coefficients)),
                               atol=1e-5, rtol=1e-5)

    # Second check: exercises the multi-tile grid + masked partial final block.
    B2 = 37
    x2 = jax.random.normal(kx2, (B2, n_features), dtype=jnp.float32)
    out2 = periodic_multi_bandwidth(x2, coefficients, tile_rows=64)
    out2 = jax.block_until_ready(out2)
    np.testing.assert_allclose(np.asarray(out2),
                               np.asarray(reference(x2, coefficients)),
                               atol=1e-5, rtol=1e-5)

    print("KERNEL_OK")
</pallas_src>

<mosaic_0001>
module attributes {stable_mosaic.version = 11 : i64} {
  func.func @periodic_kernel(%arg0: i32, %arg1: memref<16x1xf32, #tpu.memory_space<vmem>>, %arg2: memref<8x128xf32, #tpu.memory_space<vmem>>, %arg3: memref<16x256xf32, #tpu.memory_space<vmem>>) attributes {dimension_semantics = [#tpu.dimension_semantics<parallel>], iteration_bounds = array<i64: 2>, scalar_prefetch = 0 : i64, scratch_operands = 0 : i64, tpu.core_type = #tpu.core_type<tc>, window_params = [{transform_indices = @transform_0, window_bounds = array<i64: 16, 1>}, {pipeline_mode = #tpu.pipeline_mode<synchronous>, transform_indices = @transform_1, window_bounds = array<i64: 8, 128>}, {transform_indices = @transform_2, window_bounds = array<i64: 16, 256>}]} {
    %c0 = arith.constant 0 : index
    %c0_0 = arith.constant 0 : index
    %0 = vector.load %arg1[%c0, %c0_0] : memref<16x1xf32, #tpu.memory_space<vmem>>, vector<16x1xf32>
    %1 = vector.shape_cast %0 : vector<16x1xf32> to vector<2x8x1xf32>
    %c0_1 = arith.constant 0 : index
    %c0_2 = arith.constant 0 : index
    %2 = vector.load %arg2[%c0_1, %c0_2] : memref<8x128xf32, #tpu.memory_space<vmem>>, vector<8x128xf32>
    %3 = vector.shape_cast %2 : vector<8x128xf32> to vector<1x8x128xf32>
    %4 = vector.broadcast %1 : vector<2x8x1xf32> to vector<2x8x128xf32>
    %5 = vector.broadcast %3 : vector<1x8x128xf32> to vector<2x8x128xf32>
    %6 = arith.mulf %4, %5 : vector<2x8x128xf32>
    %7 = math.cos %6 : vector<2x8x128xf32>
    %8 = vector.shape_cast %7 : vector<2x8x128xf32> to vector<16x128xf32>
    %c0_3 = arith.constant 0 : index
    %c0_4 = arith.constant 0 : index
    %9 = vector.load %arg3[%c0_3, %c0_4] : memref<16x256xf32, #tpu.memory_space<vmem>>, vector<16x128xf32>
    tpu.vector_store %arg3[%c0_3, %c0_4], %8 {strides = array<i32>} : memref<16x256xf32, #tpu.memory_space<vmem>>, vector<16x128xf32>,
    %10 = vector.broadcast %1 : vector<2x8x1xf32> to vector<2x8x128xf32>
    %11 = vector.broadcast %3 : vector<1x8x128xf32> to vector<2x8x128xf32>
    %12 = arith.mulf %10, %11 : vector<2x8x128xf32>
    %13 = math.sin %12 : vector<2x8x128xf32>
    %14 = vector.shape_cast %13 : vector<2x8x128xf32> to vector<16x128xf32>
    %c0_5 = arith.constant 0 : index
    %c128 = arith.constant 128 : index
    %15 = vector.load %arg3[%c0_5, %c128] : memref<16x256xf32, #tpu.memory_space<vmem>>, vector<16x128xf32>
    tpu.vector_store %arg3[%c0_5, %c128], %14 {strides = array<i32>} : memref<16x256xf32, #tpu.memory_space<vmem>>, vector<16x128xf32>,
    return
  }
  func.func @transform_0(%arg0: i32) -> (i32, i32) {
    %c0_i32 = arith.constant 0 : i32
    %c0_i32_0 = arith.constant 0 : i32
    return %arg0, %c0_i32 : i32, i32
  }
  func.func @transform_1(%arg0: i32) -> (i32, i32) {
    %c0_i32 = arith.constant 0 : i32
    %c0_i32_0 = arith.constant 0 : i32
    %c0_i32_1 = arith.constant 0 : i32
    return %c0_i32, %c0_i32_0 : i32, i32
  }
  func.func @transform_2(%arg0: i32) -> (i32, i32) {
    %c0_i32 = arith.constant 0 : i32
    %c0_i32_0 = arith.constant 0 : i32
    return %arg0, %c0_i32 : i32, i32
  }
}

</mosaic_0001>

<bundles_post_ra>
// kernel: tpu_custom_call.1
= control target key start
LH: loop header
LB: loop body
LE: loop exit
PB: predicated region body
PF: predicated region fallthrough
CT: control target
= control target key end

     0   :  { %7 = vsyncpa [#allocation3], 0  ;;  %s1261_s0 = inlined_call_operand.vmem [shape: f32[32,1], index: 0, kind: input, shape index: {}]   ;;  %s1262_s1 = inlined_call_operand.vmem [shape: f32[8,128], index: 1, kind: input, shape index: {}]   ;;  %s1263_s2 = inlined_call_operand.hbm [shape: f32[32,256], index: 2, kind: output, shape index: {}]  }
   0x1   :  { %9 = vsyncpa [#allocation3 + $0x1], 0  ;;  %s1025_s9 = smov 0   ;;  %s1027_s10 = smov 0  }
   0x2   :  { %s1029_s11 = smov 0   ;;  %s1031_s12 = smov 0  }
   0x3 LB: > { %s1046_s13 = sadd.s32 4294967295, %s999_s12   ;;  %s861_s14 = sadd.s32 4294967294, %s999_s12   ;;  %s999_s12 = sphi %s1031_s12, %s1269_s12   ;;  %s995_s11 = sphi %s1029_s11, %s1268_s11   ;;  %s991_s10 = sphi %s1027_s10, %s1267_s10   ;;  %s987_s9 = sphi %s1025_s9, %s1266_s9  }
   0x4   : > { %s1050_s15 = sadd.s32 1, %s999_s12   ;;  %s69_s16 = sadd.s32 1, %s995_s11 }
   0x5   : > { %s66_s17 = ssub.s32 %s999_s12, %s1050_s15  ;;  %p79_p0 = scmp.ne.s32.totalorder %s995_s11, %s991_s10 }
   0x6   : > { %p67_p1 = scmp.eq.s32.totalorder %s66_s17, 0  ;;  %p80_p2 = scmp.eq.s32.totalorder %s1046_s13, 1 }
   0x7   : > { %p85_p3 = scmp.ne.s32.totalorder %s991_s10, %s987_s9  ;;  %p86_p4 = scmp.eq.s32.totalorder %s861_s14, 1 }
   0x8   : > { %s1061_s18 = scalar_select %p67_p1, %s995_s11, %s69_s16  }
   0x9   : > { %p1063_p5 = por %p80_p2, %p79_p0  ;;  %p1067_p6 = por %p86_p4, %p85_p3 }
   0xa   : > { %p864_p7 = scmp.ge.s32.totalorder %s999_s12, 1  ;;  %p116_p8 = scmp.lt.s32.totalorder %s999_s12, 3 }
   0xc   : > { %p117_p9 = pnand %p864_p7, %p116_p8 }
   0xd   : > { %s866_s21 = sshll.u32 (!%p117_p9), %s1046_s13, 1  ;;  %s135_s28 = sand.u32 (!%p117_p9), 1, %s991_s10  }
   0xe   : > { %120 = sbr.rel (%p117_p9) target bundleno = 261 (0x105), region = 28  ;;  %p139_p10 = scmp.lt.s32.totalorder (!%p117_p9), %s866_s21, 3 }
   0xf   : > { %s865_s29 = sshll.u32 (!%p117_p9), %s135_s28, 5  ;;  %s887_s3 = sshll.u32 (!%p117_p9), %s1046_s13, 5 }
  0x10   : > { %s1214_s30 = scalar_lea.vmem (!%p117_p9), [#allocation2], %s865_s29  ;;  %s795_s6 = scalar_lea.hbm (!%p117_p9), %s1263_s2, %s887_s3 }
  0x11   : > { %s796_s7 = sshll.u32 (!%p117_p9), %s1214_s30, 4  ;;  %s798_s8 = sshll.u32 (!%p117_p9), %s795_s6, 4  ;;  %s797_s7 = int_to_ptr.vmem [resolvable:$true] %s796_s7  ;;  %s799_s8 = int_to_ptr.hbm [resolvable:$true] %s798_s8 }
  0x12   : > { %s783_s13 = scalar_lea.sflag (!%p117_p9), [#allocation3], %s135_s28  ;;  %s951_s14 = sshra.s32 (!%p117_p9), %s799_s8, 4  ;;  %s952_s14 = int_to_ptr.hbm [resolvable:$true] %s951_s14 }
  0x13   : > { %v1001_v0 = vmov 0   ;;  %s1271_s21 = smov (!%p139_p10, %s866_s21), 3  ;;  %v147_v3 = vld [vmem:[%s1262_s1] sm:$0xff]  ;;  %v1002_v25 = vmov 683565275   ;;  %s953_s16 = scalar_lea.hbm %s952_s14, 32 }
  0x14   : > { %936 = vset.pattern.permute.xlu0 %v1001_v0  ;;  %s867_s22 = sshll.u32 %s1271_s21, 3  ;;  %v1003_v27 = vmov 2475754826   ;;  %v1004_v31 = vmov 2131351028   ;;  %p954_p11 = scmp.ne.s32.totalorder %s952_s14, %s953_s16 }
  0x15   : > { %s142_s25 = scalar_lea.vmem %s1261_s0, %s867_s22  ;;  %v1005_v34 = vmov 2102212464   ;;  %v1006_v37 = vmov 920167782   ;;  %v1007_v40 = vmov 1326507024   ;;  %p958_p0 = scmp.lt.s32.totalorder %s952_s14, %s1263_s2 }
  0x16   : > { %v145_v1 = vld [vmem:[%s142_s25] sm:$0xff]  ;;  %v146_v2 = vld [vmem:[%s142_s25 + $0x8] sm:$0xff]  ;;  %p955_p12 = pnand %p954_p11, %p1063_p5  ;;  %s957_s22 = scalar_lea.hbm %s1263_s2, 64 }
  0x17   : > { %150 = vperm.xlu0 %936, %v145_v1   ;;  %p959_p1 = scmp.lt.s32.totalorder %s957_s22, %s953_s16 }
  0x18   : > { %p956_p13 = pneg %p955_p12 }
  0x19   : > { %p960_p2 = por %p959_p1, %p958_p0 }
  0x1b   : > { %p961_p3 = pnand %p960_p2, %p956_p13 }
  0x1f   : > { %155 = vperm.xlu0 %936, %v146_v2  }
  0x89   : > { %v151_v4 = vpop.permute.xlu0 %150 }
  0x8a   : > { %v1081_v5 = vmul.f32 %v151_v4, %v147_v3 }
  0x8c   : > { %v160_v6 = vand.u32 2147483647, %v1081_v5  ;;  %v163_v7 = vand.u32 2139095040, %v1081_v5 }
  0x8e   : > { %v164_v8 = vshrl.u32 %v163_v7, 23  ;;  %v167_v9 = vand.u32 8388607, %v160_v6 }
  0x90   : > { %v868_v10 = vadd.s32 4294967169, %v164_v8  ;;  %v168_v11 = vor.u32 8388608, %v167_v9 }
  0x91   : > { %v156_v12 = vpop.permute.xlu0 %155 }
  0x92   : > { %v170_v13 = vadd.s32 1, %v868_v10  ;;  %v1087_v14 = vmul.f32 %v156_v12, %v147_v3  ;;  %v1089_v15 = vshll.u32 %v168_v11, 8 }
  0x94   : > { %vm171_vm0 = vcmp.gt.s32.totalorder %v170_v13, 0  ;;  %v314_v17 = vand.u32 2147483647, %v1087_v14  ;;  %v317_v18 = vand.u32 2139095040, %v1087_v14  ;;  %v209_v21 = vand.u32 65535, %v1089_v15 }
  0x95   : > { %v172_v16 = vsel %vm171_vm0, %v170_v13, 0  ;;  %v210_v22 = vshrl.u32 %v1089_v15, 16 }
  0x96   : > { %v174_v19 = vand.u32 31, %v172_v16  ;;  %v318_v23 = vshrl.u32 %v317_v18, 23  ;;  %v173_v24 = vshrl.u32 %v172_v16, 5  ;;  %v1099_v29 = vand.u32 8388607, %v314_v17 }
  0x98   : > { %v175_v20 = vsub.s32 32, %v174_v19  ;;  %v177_v26 = vshll.u32 %v1002_v25, %v174_v19  ;;  %v180_v28 = vshll.u32 %v1003_v27, %v174_v19  ;;  %v183_v33 = vshll.u32 %v1004_v31, %v174_v19 }
  0x99   : > { %v186_v36 = vshll.u32 %v1005_v34, %v174_v19  ;;  %v189_v39 = vshll.u32 %v1006_v37, %v174_v19  ;;  %v871_v45 = vadd.s32 4294967169, %v318_v23  ;;  %vm192_vm1 = vcmp.lt.s32.totalorder %v173_v24, 1 }
  0x9a   : > { %v178_v30 = vshrl.u32 %v1003_v27, %v175_v20  ;;  %v181_v32 = vshrl.u32 %v1004_v31, %v175_v20  ;;  %v184_v35 = vshrl.u32 %v1005_v34, %v175_v20  ;;  %v187_v38 = vshrl.u32 %v1006_v37, %v175_v20 }
  0x9b   : > { %v190_v41 = vshrl.u32 %v1007_v40, %v175_v20  ;;  %vm195_vm2 = vcmp.lt.s32.totalorder %v173_v24, 4  ;;  %v176_v48 = vshrl.u32 %v1002_v25, %v175_v20  ;;  %vm194_vm3 = vcmp.lt.s32.totalorder %v173_v24, 3 }
  0x9c   : > { %v179_v42 = vor.u32 %v178_v30, %v177_v26  ;;  %v182_v43 = vor.u32 %v181_v32, %v180_v28  ;;  %v185_v44 = vor.u32 %v184_v35, %v183_v33  ;;  %v188_v46 = vor.u32 %v187_v38, %v186_v36 }
  0x9d   : > { %v191_v47 = vor.u32 %v190_v41, %v189_v39  ;;  %v324_v54 = vadd.s32 1, %v871_v45  ;;  %vm193_vm4 = vcmp.lt.s32.totalorder %v173_v24, 2  ;;  %v322_v2 = vor.u32 8388608, %v1099_v29 }
  0x9e   : > { %v197_v49 = vsel %vm195_vm2, %v185_v44, 2102212464  ;;  %v200_v50 = vsel %vm192_vm1, %v179_v42, %v182_v43  ;;  %v204_v51 = vsel %vm192_vm1, %v182_v43, %v185_v44  ;;  %v201_v52 = vsel %vm195_vm2, %v188_v46, 920167782 }
  0x9f   : > { %v205_v53 = vsel %vm195_vm2, %v191_v47, 1326507024  ;;  %v196_v55 = vsel %vm192_vm1, %v176_v48, %v179_v42  ;;  %v202_v56 = vsel %vm194_vm3, %v185_v44, %v201_v52  ;;  %v198_v58 = vsel %vm194_vm3, %v182_v43, %v197_v49 }
  0xa0   : > { %v206_v57 = vsel %vm194_vm3, %v188_v46, %v205_v53  ;;  %v203_v59 = vsel %vm193_vm4, %v200_v50, %v202_v56  ;;  %vm325_vm5 = vcmp.gt.s32.totalorder %v324_v54, 0  ;;  %v1111_v3 = vsel %vm193_vm4, %v196_v55, %v198_v58 }
  0xa1   : > { %v207_v60 = vsel %vm193_vm4, %v204_v51, %v206_v57  ;;  %v233_v63 = vand.u32 65535, %v203_v59  ;;  %v234_v1 = vshrl.u32 %v203_v59, 16  ;;  %v326_v8 = vsel %vm325_vm5, %v324_v54, 0 }
  0xa2   : > { %v211_v61 = vand.u32 65535, %v207_v60  ;;  %v212_v62 = vshrl.u32 %v207_v60, 16  ;;  %v328_v30 = vand.u32 31, %v326_v8  ;;  %v1118_v41 = vshrl.u32 %v326_v8, 5 }
  0xa3   : > { %v236_v11 = vmul.u32 %v234_v1, %v209_v21  ;;  %v237_v12 = vmul.u32 %v233_v63, %v210_v22  ;;  %v235_v18 = vmul.u32 %v233_v63, %v209_v21  ;;  %v238_v19 = vmul.u32 %v234_v1, %v210_v22 }
  0xa4   : > { %v214_v4 = vmul.u32 %v212_v62, %v209_v21  ;;  %v215_v7 = vmul.u32 %v211_v61, %v210_v22  ;;  %v213_v9 = vmul.u32 %v211_v61, %v209_v21  ;;  %v216_v10 = vmul.u32 %v212_v62, %v210_v22 }
  0xa5   : > { %v239_v24 = vshll.u32 %v236_v11, 16  ;;  %v240_v26 = vshrl.u32 %v236_v11, 16  ;;  %v241_v29 = vshll.u32 %v237_v12, 16  ;;  %v242_v33 = vshrl.u32 %v237_v12, 16 }
  0xa6   : > { %v217_v13 = vshll.u32 %v214_v4, 16  ;;  %v218_v16 = vshrl.u32 %v214_v4, 16  ;;  %v219_v20 = vshll.u32 %v215_v7, 16  ;;  %v220_v23 = vshrl.u32 %v215_v7, 16 }
  0xa7   : > { %vm243_vm7 = vc.u32 %v235_v18, %v239_v24  ;;  %v245_v35 = vadd.s32 %v239_v24, %v235_v18  ;;  %v1115_v39 = vsub.s32 32, %v328_v30  ;;  %v331_v45 = vshll.u32 %v1002_v25, %v328_v30 }
  0xa8   : > { %vm221_vm6 = vc.u32 %v213_v9, %v217_v13  ;;  %v223_v28 = vadd.s32 %v217_v13, %v213_v9  ;;  %v244_v38 = vsel %vm243_vm7, 1, %v1001_v0  ;;  %v334_v48 = vshll.u32 %v1003_v27, %v328_v30 }
  0xa9   : > { %v222_v32 = vsel %vm221_vm6, 1, %v1001_v0  ;;  %v246_v22 = vadd.s32 %v244_v38, %v238_v19  ;;  %vm247_vm9 = vc.u32 %v245_v35, %v241_v29  ;;  %v1121_v44 = vadd.s32 %v245_v35, %v241_v29 }
  0xaa   : > { %v224_v36 = vadd.s32 %v222_v32, %v216_v10  ;;  %vm225_vm8 = vc.u32 %v223_v28, %v219_v20  ;;  %v248_v43 = vsel %vm247_vm9, 1, %v1001_v0  ;;  %v332_v47 = vshrl.u32 %v1003_v27, %v1115_v39 }
  0xab   : > { %v226_v21 = vsel %vm225_vm8, 1, %v1001_v0  ;;  %v250_v46 = vadd.s32 %v248_v43, %v246_v22  ;;  %v335_v49 = vshrl.u32 %v1004_v31, %v1115_v39  ;;  %v337_v51 = vshll.u32 %v1004_v31, %v328_v30 }
  0xac   : > { %v228_v42 = vadd.s32 %v226_v21, %v224_v36  ;;  %v338_v52 = vshrl.u32 %v1005_v34, %v1115_v39  ;;  %v340_v53 = vshll.u32 %v1005_v34, %v328_v30  ;;  %v1133_v55 = vor.u32 %v332_v47, %v331_v45 }
  0xad   : > { %v251_v54 = vadd.s32 %v250_v46, %v240_v26  ;;  %v1135_v56 = vor.u32 %v335_v49, %v334_v48  ;;  %v341_v57 = vshrl.u32 %v1006_v37, %v1115_v39  ;;  %v343_v59 = vshll.u32 %v1006_v37, %v328_v30 }
  0xae   : > { %v229_v50 = vadd.s32 %v228_v42, %v218_v16  ;;  %v339_v58 = vor.u32 %v338_v52, %v337_v51  ;;  %v344_v31 = vshrl.u32 %v1007_v40, %v1115_v39  ;;  %vm346_vm11 = vcmp.lt.s32.totalorder %v1118_v41, 1 }
  0xaf   : > { %v252_v60 = vadd.s32 %v251_v54, %v242_v33  ;;  %v342_v61 = vor.u32 %v341_v57, %v340_v53  ;;  %v1147_v62 = vshll.u32 %v322_v2, 8  ;;  %v253_v63 = vmul.u32 %v1089_v15, %v1111_v3 }
  0xb0   : > { %v1139_v27 = vadd.s32 %v229_v50, %v220_v23  ;;  %v345_v34 = vor.u32 %v344_v31, %v343_v59  ;;  %vm349_vm12 = vcmp.lt.s32.totalorder %v1118_v41, 4  ;;  %v354_v37 = vsel %vm346_vm11, %v1133_v55, %v1135_v56 }
  0xb1   : > { %v256_v1 = vadd.s32 1, %v252_v60  ;;  %vm348_vm13 = vcmp.lt.s32.totalorder %v1118_v41, 3  ;;  %v355_v40 = vsel %vm349_vm12, %v342_v61, 920167782  ;;  %v358_v2 = vsel %vm346_vm11, %v1135_v56, %v339_v58 }
  0xb2   : > { %vm255_vm10 = vc.u32 %v1139_v27, %v1121_v44  ;;  %v359_v15 = vsel %vm349_vm12, %v345_v34, 1326507024  ;;  %vm347_vm14 = vcmp.lt.s32.totalorder %v1118_v41, 2  ;;  %v356_v4 = vsel %vm348_vm13, %v339_v58, %v355_v40 }
  0xb3   : > { %v257_v3 = vsel %vm255_vm10, %v256_v1, %v252_v60  ;;  %v360_v7 = vsel %vm348_vm13, %v342_v61, %v359_v15  ;;  %v357_v9 = vsel %vm347_vm14, %v354_v37, %v356_v4  ;;  %v363_v11 = vand.u32 65535, %v1147_v62 }
  0xb4   : > { %v258_v8 = vadd.s32 %v257_v3, %v253_v63  ;;  %v361_v10 = vsel %vm347_vm14, %v358_v2, %v360_v7  ;;  %v364_v12 = vshrl.u32 %v1147_v62, 16  ;;  %v388_v18 = vshrl.u32 %v357_v9, 16 }
  0xb5   : > { %v365_v13 = vand.u32 65535, %v361_v10  ;;  %v366_v16 = vshrl.u32 %v361_v10, 16  ;;  %v387_v24 = vand.u32 65535, %v357_v9  ;;  %v330_v59 = vshrl.u32 %v1002_v25, %v1115_v39 }
  0xb6   : > { %v259_v19 = vadd.s32 536870912, %v258_v8  ;;  %v390_v28 = vmul.u32 %v388_v18, %v363_v11  ;;  %v392_v48 = vmul.u32 %v388_v18, %v364_v12  ;;  %v351_v31 = vsel %vm349_vm12, %v339_v58, 2102212464 }
  0xb7   : > { %v368_v20 = vmul.u32 %v366_v16, %v363_v11  ;;  %v369_v23 = vmul.u32 %v365_v13, %v364_v12  ;;  %v367_v29 = vmul.u32 %v365_v13, %v363_v11  ;;  %v370_v33 = vmul.u32 %v366_v16, %v364_v12 }
  0xb8   : > { %v1175_v26 = vshrl.u32 %v259_v19, 30  ;;  %v393_v35 = vshll.u32 %v390_v28, 16  ;;  %v389_v21 = vmul.u32 %v387_v24, %v363_v11  ;;  %v391_v43 = vmul.u32 %v387_v24, %v364_v12 }
  0xb9   : > { %v371_v30 = vshll.u32 %v368_v20, 16  ;;  %v373_v36 = vshll.u32 %v369_v23, 16  ;;  %v372_v60 = vshrl.u32 %v368_v20, 16  ;;  %v350_v34 = vsel %vm346_vm11, %v330_v59, %v1133_v55 }
  0xba   : > { %v261_v32 = vshll.u32 %v1175_v26, 30  ;;  %vm397_vm1 = vc.u32 %v389_v21, %v393_v35  ;;  %v399_v50 = vadd.s32 %v393_v35, %v389_v21  ;;  %v395_v52 = vshll.u32 %v391_v43, 16 }
  0xbb   : > { %vm375_vm15 = vc.u32 %v367_v29, %v371_v30  ;;  %v377_v38 = vadd.s32 %v371_v30, %v367_v29  ;;  %v398_v49 = vsel %vm397_vm1, 1, %v1001_v0  ;;  %v374_v63 = vshrl.u32 %v369_v23, 16 }
  0xbc   : > { %v262_v22 = vsub.s32 %v258_v8, %v261_v32  ;;  %v376_v42 = vsel %vm375_vm15, 1, %v1001_v0  ;;  %v400_v57 = vadd.s32 %v398_v49, %v392_v48  ;;  %vm401_vm3 = vc.u32 %v399_v50, %v395_v52 }
  0xbd   : > { %v378_v45 = vadd.s32 %v376_v42, %v370_v33  ;;  %vm379_vm0 = vc.u32 %v377_v38, %v373_v36  ;;  %v402_v37 = vsel %vm401_vm3, 1, %v1001_v0  ;;  %v352_v40 = vsel %vm348_vm13, %v1135_v56, %v351_v31 }
  0xbe   : > { %vm263_vm2 = vcmp.lt.s32.totalorder %v262_v22, 0  ;;  %v264_v46 = vsub.s32 0, %v262_v22  ;;  %v380_v47 = vsel %vm379_vm0, 1, %v1001_v0  ;;  %v394_v25 = vshrl.u32 %v390_v28, 16 }
  0xbf   : > { %v382_v54 = vadd.s32 %v380_v47, %v378_v45  ;;  %v404_v39 = vadd.s32 %v402_v37, %v400_v57  ;;  %v254_v58 = vadd.s32 %v1121_v44, %v1139_v27  ;;  %v396_v7 = vshrl.u32 %v391_v43, 16 }
  0xc0   : > { %v265_v51 = vsel %vm263_vm2, %v264_v46, %v262_v22  ;;  %v353_v8 = vsel %vm347_vm14, %v350_v34, %v352_v40  ;;  %v403_v0 = vadd.s32 %v399_v50, %v395_v52  ;;  %vm162_vm6 = vcmp.lt.s32.totalorder %v1081_v5, 0 }
  0xc1   : > { %v266_v53 = vclz %v265_v51  ;;  %v383_v1 = vadd.s32 %v382_v54, %v372_v60  ;;  %v405_v55 = vadd.s32 %v404_v39, %v394_v25  ;;  %v407_v44 = vmul.u32 %v1147_v62, %v353_v8 }
  0xc2   : > { %vm161_vm7 = vcmp.le.f32.partialorder %v160_v6, 0.7853982  ;;  %v284_v62 = vsub.s32 4, %v1175_v26  ;;  %vm303_vm10 = vweird.f32 %v1081_v5  ;;  %vm316_vm1 = vcmp.lt.s32.totalorder %v1087_v14, 0 }
  0xc3   : > { %v869_v61 = vadd.s32 4294967294, %v266_v53  ;;  %v384_v15 = vadd.s32 %v383_v1, %v374_v63  ;;  %v406_v12 = vadd.s32 %v405_v55, %v396_v7  ;;  %vm315_vm2 = vcmp.le.f32.partialorder %v314_v17, 0.7853982 }
  0xc4   : > { %v285_v42 = vsel %vm162_vm6, %v284_v62, %v1175_v26 }
  0xc5   : > { %vm870_vm4 = vcmp.lt.s32.totalorder %v869_v61, 0  ;;  %vm409_vm5 = vc.u32 %v384_v15, %v403_v0  ;;  %v410_v16 = vadd.s32 1, %v406_v12  ;;  %v287_v48 = vsel %vm161_vm7, 0, %v285_v42 }
  0xc6   : > { %v269_v2 = vsel %vm870_vm4, 0, %v869_v61  ;;  %v614_v53 = vadd.s32 3, %v287_v48  ;;  %v408_v31 = vadd.s32 %v403_v0, %v384_v15  ;;  %v304_v63 = vand.u32 3, %v287_v48 }
  0xc7   : > { %v270_v3 = vsub.s32 32, %v269_v2  ;;  %v274_v4 = vsub.s32 4294967266, %v269_v2  ;;  %v271_v9 = vshll.u32 %v262_v22, %v269_v2  ;;  %v411_v18 = vsel %vm409_vm5, %v410_v16, %v406_v12 }
  0xc8   : > { %v412_v19 = vadd.s32 %v411_v18, %v407_v44  ;;  %v615_v37 = vand.u32 3, %v614_v53  ;;  %vm305_vm11 = vcmp.lt.s32.totalorder %v304_v63, 2  ;;  %vm306_vm12 = vcmp.eq.s32.totalorder %v304_v63, 0 }
  0xc9   : > { %v272_v10 = vshrl.u32 %v254_v58, %v270_v3  ;;  %v275_v11 = vadd.s32 127, %v274_v4  ;;  %vm309_vm13 = vcmp.eq.s32.totalorder %v304_v63, 2 }
  0xca   : > { %v413_v24 = vadd.s32 536870912, %v412_v19  ;;  %vm616_vm14 = vcmp.lt.s32.totalorder %v615_v37, 2  ;;  %vm617_vm15 = vcmp.eq.s32.totalorder %v615_v37, 0  ;;  %vm620_vm0 = vcmp.eq.s32.totalorder %v615_v37, 2 }
  0xcb   : > { %v273_v56 = vor.u32 %v272_v10, %v271_v9  ;;  %v276_v13 = vshll.u32 %v275_v11, 23 }
  0xcc   : > { %v1197_v41 = vshrl.u32 %v413_v24, 30 }
  0xcd   : > { %v277_v27 = vor.u32 4788187, %v276_v13  ;;  %v280_v23 = vcvt.s32.f32 %v273_v56 }
  0xce   : > { %v415_v30 = vshll.u32 %v1197_v41, 30  ;;  %v438_v18 = vsub.s32 4, %v1197_v41 }
  0xcf   : > { %v278_v20 = vand.u32 2147483647, %v277_v27 }
  0xd0   : > { %v416_v35 = vsub.s32 %v412_v19, %v415_v30  ;;  %v439_v24 = vsel %vm316_vm1, %v438_v18, %v1197_v41 }
  0xd1   : > { %v281_v28 = vmul.f32 %v280_v23, %v278_v20  ;;  %v441_v30 = vsel %vm315_vm2, 0, %v439_v24 }
  0xd2   : > { %vm417_vm8 = vcmp.lt.s32.totalorder %v416_v35, 0  ;;  %v418_v38 = vsub.s32 0, %v416_v35  ;;  %v769_v17 = vadd.s32 3, %v441_v30  ;;  %v458_v42 = vand.u32 3, %v441_v30 }
  0xd3   : > { %v282_v29 = vxor.u32 2147483648, %v281_v28 }
  0xd4   : > { %v419_v43 = vsel %vm417_vm8, %v418_v38, %v416_v35  ;;  %vm459_vm3 = vcmp.lt.s32.totalorder %v458_v42, 2  ;;  %vm460_vm4 = vcmp.eq.s32.totalorder %v458_v42, 0  ;;  %vm463_vm5 = vcmp.eq.s32.totalorder %v458_v42, 2 }
  0xd5   : > { %v283_v32 = vsel %vm162_vm6, %v282_v29, %v281_v28  ;;  %v420_v47 = vclz %v419_v43  ;;  %v770_v43 = vand.u32 3, %v769_v17 }
  0xd6   : > { %v286_v33 = vsel %vm161_vm7, %v1081_v5, %v283_v32 }
  0xd7   : > { %v288_v36 = vmul.f32 %v286_v33, %v286_v33  ;;  %v872_v50 = vadd.s32 4294967294, %v420_v47  ;;  %vm771_vm6 = vcmp.lt.s32.totalorder %v770_v43, 2  ;;  %vm772_vm7 = vcmp.eq.s32.totalorder %v770_v43, 0 }
  0xd8   : > { %vm775_vm8 = vcmp.eq.s32.totalorder %v770_v43, 2 }
  0xd9   : > { %v289_v21 = vmul.f32 -0.001358992, %v288_v36  ;;  %v296_v22 = vmul.f32 -0.00019511016, %v288_v36  ;;  %vm873_vm9 = vcmp.lt.s32.totalorder %v872_v50, 0 }
  0xda   : > { %v423_v54 = vsel %vm873_vm9, 0, %v872_v50  ;;  %vm457_vm9 = vweird.f32 %v1087_v14 }
  0xdb   : > { %v290_v45 = vadd.f32 0.041655596, %v289_v21  ;;  %v297_v46 = vadd.f32 0.008332121, %v296_v22  ;;  %v424_v60 = vsub.s32 32, %v423_v54  ;;  %v428_v26 = vsub.s32 4294967266, %v423_v54 }
  0xdc   : > { %v425_v40 = vshll.u32 %v416_v35, %v423_v54 }
  0xdd   : > { %v291_v6 = vmul.f32 %v290_v45, %v288_v36  ;;  %v298_v49 = vmul.f32 %v297_v46, %v288_v36  ;;  %v426_v1 = vshrl.u32 %v408_v31, %v424_v60  ;;  %v429_v25 = vadd.s32 127, %v428_v26 }
  0xdf   : > { %v292_v51 = vadd.f32 -0.4999988, %v291_v6  ;;  %v299_v52 = vadd.f32 -0.16666654, %v298_v49  ;;  %v427_v2 = vor.u32 %v426_v1, %v425_v40  ;;  %v430_v3 = vshll.u32 %v429_v25, 23 }
  0xe1   : > { %v293_v57 = vmul.f32 %v292_v51, %v288_v36  ;;  %v300_v59 = vmul.f32 %v299_v52, %v288_v36  ;;  %v431_v4 = vor.u32 4788187, %v430_v3  ;;  %v434_v12 = vcvt.s32.f32 %v427_v2 }
  0xe3   : > { %v294_v61 = vadd.f32 1.0, %v293_v57  ;;  %v301_v34 = vadd.f32 1.0, %v300_v59  ;;  %v432_v11 = vand.u32 2147483647, %v431_v4 }
  0xe5   : > { %v302_v39 = vmul.f32 %v301_v34, %v286_v33  ;;  %v310_v58 = vxor.u32 2147483648, %v294_v61  ;;  %v435_v16 = vmul.f32 %v434_v12, %v432_v11 }
  0xe7   : > { %v307_v15 = vxor.u32 2147483648, %v302_v39  ;;  %v311_v55 = vsel %vm309_vm13, %v310_v58, %v302_v39  ;;  %v622_v0 = vsel %vm620_vm0, %v310_v58, %v302_v39  ;;  %v436_v44 = vxor.u32 2147483648, %v435_v16 }
  0xe9   : > { %v308_v7 = vsel %vm306_vm12, %v294_v61, %v307_v15  ;;  %v619_v8 = vsel %vm617_vm15, %v294_v61, %v307_v15  ;;  %v437_v27 = vsel %vm316_vm1, %v436_v44, %v435_v16 }
  0xea   : > { %v312_v9 = vsel %vm305_vm11, %v308_v7, %v311_v55  ;;  %v623_v10 = vsel %vm616_vm14, %v619_v8, %v622_v0  ;;  %v440_v5 = vsel %vm315_vm2, %v1087_v14, %v437_v27 }
  0xeb   : > { %v313_v56 = vsel %vm303_vm10, nan, %v312_v9  ;;  %v624_v13 = vsel %vm303_vm10, nan, %v623_v10  ;;  %v442_v19 = vmul.f32 %v440_v5, %v440_v5 }
  0xec   : > { %468 = vst [vmem:[%s1214_s30] sm:$0xff] %v313_v56 }
  0xed   : > { %780 = vst [vmem:[%s1214_s30 + $0x8] sm:$0xff] %v624_v13  ;;  %v443_v20 = vmul.f32 -0.001358992, %v442_v19  ;;  %v450_v23 = vmul.f32 -0.00019511016, %v442_v19 }
  0xef   : > { %v444_v28 = vadd.f32 0.041655596, %v443_v20  ;;  %v451_v29 = vadd.f32 0.008332121, %v450_v23 }
  0xf1   : > { %v445_v32 = vmul.f32 %v444_v28, %v442_v19  ;;  %v452_v62 = vmul.f32 %v451_v29, %v442_v19 }
  0xf3   : > { %v446_v33 = vadd.f32 -0.4999988, %v445_v32  ;;  %v453_v35 = vadd.f32 -0.16666654, %v452_v62 }
  0xf5   : > { %v447_v36 = vmul.f32 %v446_v33, %v442_v19  ;;  %v454_v38 = vmul.f32 %v453_v35, %v442_v19 }
  0xf7   : > { %v448_v21 = vadd.f32 1.0, %v447_v36  ;;  %v455_v22 = vadd.f32 1.0, %v454_v38 }
  0xf9   : > { %v456_v41 = vmul.f32 %v455_v22, %v440_v5  ;;  %v464_v45 = vxor.u32 2147483648, %v448_v21 }
  0xfb   : > { %v461_v46 = vxor.u32 2147483648, %v456_v41  ;;  %v465_v48 = vsel %vm463_vm5, %v464_v45, %v456_v41  ;;  %v777_v49 = vsel %vm775_vm8, %v464_v45, %v456_v41 }
  0xfd   : > { %v462_v47 = vsel %vm460_vm4, %v448_v21, %v461_v46  ;;  %v774_v6 = vsel %vm772_vm7, %v448_v21, %v461_v46 }
  0xfe   : > { %v466_v50 = vsel %vm459_vm3, %v462_v47, %v465_v48  ;;  %v778_v51 = vsel %vm771_vm6, %v774_v6, %v777_v49 }
  0xff   : > { %v467_v52 = vsel %vm457_vm9, nan, %v466_v50  ;;  %v779_v53 = vsel %vm457_vm9, nan, %v778_v51 }
 0x100   : > { %469 = vst [vmem:[%s1214_s30 + $0x10] sm:$0xff] %v467_v52 }
 0x101   : > { %781 = vst [vmem:[%s1214_s30 + $0x18] sm:$0xff] %v779_v53 }
 0x102   : > { %964 = shalt.err (!%p961_p3)
}
 0x103   : > { %s1008_s25 = smov 256   ;;  %s1009_s26 = smov 16  }
 0x104   : > { %888 = dma.vmem_to_hbm [thread:$0]  (%p1063_p5), %s797_s7, 512, %s799_s8, %s783_s13, %s1008_s25, %s1008_s25, %s1009_s26  }
 0x105 PF: > { %p894_p4 = scmp.ge.s32.totalorder %s999_s12, 2  ;;  %s813_s27 = sand.u32 1, %s987_s9  }
 0x106   : > { %s814_s28 = scalar_lea.sflag [#allocation3], %s813_s27 }
 0x107   : > { %p891_p7 = pnand %p894_p4, %p1067_p6 }
 0x109   : > { %p892_p8 = pneg %p891_p7 }
 0x10b   : > { %982 = dma.done.wait (%p892_p8), %s814_s28, 512  }
 0x10c   : > { %984 = vsyncadd (%p892_p8), %s814_s28, 4294966784  ;;  %p12_p9 = scmp.ge.s32.totalorder %s1050_s15, 4   ;;  %s1266_s9 = smov %s991_s10 }
 0x10d   : > { %s1267_s10 = smov %s995_s11  ;;  %s1268_s11 = smov %s1061_s18 }
 0x10e   : > { %s1269_s12 = smov %s1050_s15  ;;  %14 = sbr.rel (!%p12_p9) target bundleno = 3 (0x3), region = 63 }
 0x113   :  { %820 = vsyncpa [#allocation3], 1 }
 0x114   :  { %822 = vsyncpa [#allocation3 + $0x1], 1 }

</bundles_post_ra>
